<compile_context>
chip_gen: v7x
topology: tpu7x:2x2x1
jax: 0.10.0
libtpu: 0.0.40
codegen_flags: <defaults>
</compile_context>

<pallas_src>
import functools

import jax
import jax.numpy as jnp
from jax.experimental import pallas as pl
from jax.experimental.pallas import tpu as pltpu

_LANE = 128


# -------------------- Pallas kernel --------------------


def _pinn_kernel(x_ref, w0_ref, b0_ref, w1_ref, b1_ref, w1t_ref,
                 w2t_ref, b2_ref, w2sum_ref, out_ref):
    # Lane-dense layout: batch on the lane (last) axis.
    x = x_ref[...]                       # [d_in, tn]
    w0 = w0_ref[...]                     # [H0, d_in]
    d_in = x.shape[0]
    d_out = w2t_ref.shape[1]

    # ---- layer 0 (contraction K = d_in, tiny): VPU broadcast multiply-adds ----
    z0 = w0[:, 0:1] * x[0:1, :]                                   # [H0, tn]
    for j in range(1, d_in):
        z0 = z0 + w0[:, j:j + 1] * x[j:j + 1, :]
    z0 = z0 + b0_ref[...]
    h0 = jnp.tanh(z0)                                             # [H0, tn]

    # ---- layer 1 (H x H): MXU ----
    z1 = jnp.dot(w1_ref[...], h0, preferred_element_type=jnp.float32) + b1_ref[...]
    h1 = jnp.tanh(z1)                                             # [H1, tn]

    # ---- output layer (M = d_out, tiny): elementwise mul + sublane reduce (XLU) ----
    w2t = w2t_ref[...]                                            # [H1, d_out]
    b2 = b2_ref[...]                                              # [d_out, 1]
    for m in range(d_out):
        y_m = jnp.sum(w2t[:, m:m + 1] * h1, axis=0, keepdims=True) + b2[m:m + 1, 0:1]
        out_ref[m:m + 1, :] = y_m.astype(out_ref.dtype)           # [1, tn]

    # ---- backward: VJP w.r.t. x with cotangent = ones ----
    # ones^T @ W2 == sum(W2, axis=0) -> precomputed [H1, 1], lane-broadcast here.
    gz1 = w2sum_ref[...] * (1.0 - h1 * h1)                        # [H1, tn]
    gh0 = jnp.dot(w1t_ref[...], gz1, preferred_element_type=jnp.float32)  # [H0, tn]
    gz0 = gh0 * (1.0 - h0 * h0)                                   # [H0, tn]
    # d[j] = sum_h W0[h, j] * gz0[h]  -> sublane reduce, MXU stays idle.
    for j in range(d_in):
        d_j = jnp.sum(w0[:, j:j + 1] * gz0, axis=0, keepdims=True)
        out_ref[d_out + j:d_out + j + 1, :] = d_j.astype(out_ref.dtype)


# -------------------- wrapper --------------------


def pinn_forward(x, params, *, tn=512):
    """x: [N, D_in] float32.  params: (w0, b0, w1, b1, w2, b2) in PyTorch layout
    (W_i: [out_i, in_i], b_i: [1, out_i]).  Returns [N, D_out + D_in]."""
    w0, b0, w1, b1, w2, b2 = params
    n, d_in = x.shape
    d_out = w2.shape[0]

    # ---- tile-size selection: lane-align the batch, keep >=2 grid steps when
    # possible so v7x's 2 TensorCores both get work (no-op on v5e/v6e). ----
    n_lane = pl.cdiv(n, _LANE) * _LANE
    tn_eff = min(tn, n_lane)
    if n_lane // tn_eff < 2 and n_lane >= 2 * _LANE:
        tn_eff = (n_lane // 2) // _LANE * _LANE
    n_pad = pl.cdiv(n_lane, tn_eff) * tn_eff

    # ---- wrapper-side layout plumbing (runs once, outside the grid loop) ----
    xt = x.T                                        # [D_in, N] -> batch on lanes
    if n_pad != n:
        xt = jnp.pad(xt, ((0, 0), (0, n_pad - n)))  # pad batch to a tile multiple
    b0c = b0.reshape(-1, 1)                         # [H0, 1]  (lane-broadcast bias)
    b1c = b1.reshape(-1, 1)                         # [H1, 1]
    b2c = b2.reshape(-1, 1)                         # [D_out, 1]
    w1t = w1.T                                      # [H0, H1] for backward chain
    w2t = w2.T                                      # [H1, D_out]
    w2sum = jnp.sum(w2, axis=0, keepdims=True).T    # [H1, 1]  == ones^T @ W2

    full = lambda a: pl.BlockSpec(a.shape, lambda i: (0, 0))

    out_t = pl.pallas_call(
        _pinn_kernel,
        out_shape=jax.ShapeDtypeStruct((d_out + d_in, n_pad), jnp.float32),
        grid_spec=pltpu.PrefetchScalarGridSpec(
            num_scalar_prefetch=0,
            grid=(n_pad // tn_eff,),
            in_specs=[
                pl.BlockSpec((d_in, tn_eff), lambda i: (0, i)),   # x tile (lane-dense)
                full(w0), full(b0c),
                full(w1), full(b1c), full(w1t),
                full(w2t), full(b2c), full(w2sum),
            ],
            out_specs=pl.BlockSpec((d_out + d_in, tn_eff), lambda i: (0, i)),
        ),
        compiler_params=pltpu.CompilerParams(
            dimension_semantics=("parallel",),
        ),
    )(xt, w0, b0c, w1, b1c, w1t, w2t, b2c, w2sum)

    # One transpose back to row-major; rows [0:d_out] are y, [d_out:] are d
    # == hstack([output, d]) in the PyTorch convention.
    return out_t[:, :n].T


# -------------------- pure-JAX reference (for verification) --------------------


def _mlp_ref(x, params):
    w0, b0, w1, b1, w2, b2 = params
    h = jnp.tanh(x @ w0.T + b0)
    h = jnp.tanh(h @ w1.T + b1)
    return h @ w2.T + b2


def pinn_ref(x, params):
    y, vjp_fn = jax.vjp(lambda xx: _mlp_ref(xx, params), x)
    (d,) = vjp_fn(jnp.ones_like(y))
    return jnp.hstack((y, d))


# -------------------- driver --------------------

if __name__ == "__main__":
    # layers = [2, 32, 32, 1]  (typical PINN: 2 spatio-temporal inputs -> 1 field)
    layers = [2, 32, 32, 1]
    n = 1024           # two 512-wide lane tiles -> grid=(2,), both v7x TCs busy

    key = jax.random.PRNGKey(0)
    keys = jax.random.split(key, 7)

    x = jax.random.normal(keys[0], (n, layers[0]), dtype=jnp.float32)

    def init_linear(kw, kb, fan_in, fan_out):
        bound = 1.0 / jnp.sqrt(fan_in)
        w = jax.random.uniform(kw, (fan_out, fan_in), jnp.float32, -bound, bound)
        b = jax.random.uniform(kb, (1, fan_out), jnp.float32, -bound, bound)
        return w, b

    w0, b0 = init_linear(keys[1], keys[2], layers[0], layers[1])
    w1, b1 = init_linear(keys[3], keys[4], layers[1], layers[2])
    w2, b2 = init_linear(keys[5], keys[6], layers[2], layers[3])
    params = (w0, b0, w1, b1, w2, b2)

    pinn_fn = jax.jit(functools.partial(pinn_forward, tn=512))
    out = jax.block_until_ready(pinn_fn(x, params))

    ref = pinn_ref(x, params)
    assert out.shape == (n, layers[-1] + layers[0]), out.shape
    assert jnp.allclose(out, ref, atol=2e-5, rtol=1e-4), float(
        jnp.max(jnp.abs(out - ref))
    )

    print("KERNEL_OK")
</pallas_src>

<mosaic_0001>
module attributes {stable_mosaic.version = 11 : i64} {
  func.func @_pinn_kernel(%arg0: i32, %arg1: memref<2x512xf32, #tpu.memory_space<vmem>>, %arg2: memref<32x2xf32, #tpu.memory_space<vmem>>, %arg3: memref<32x1xf32, #tpu.memory_space<vmem>>, %arg4: memref<32x32xf32, #tpu.memory_space<vmem>>, %arg5: memref<32x1xf32, #tpu.memory_space<vmem>>, %arg6: memref<32x32xf32, #tpu.memory_space<vmem>>, %arg7: memref<32x1xf32, #tpu.memory_space<vmem>>, %arg8: memref<1x1xf32, #tpu.memory_space<vmem>>, %arg9: memref<32x1xf32, #tpu.memory_space<vmem>>, %arg10: memref<3x512xf32, #tpu.memory_space<vmem>>) attributes {dimension_semantics = [#tpu.dimension_semantics<parallel>], iteration_bounds = array<i64: 2>, scalar_prefetch = 0 : i64, scratch_operands = 0 : i64, tpu.core_type = #tpu.core_type<tc>, window_params = [{transform_indices = @transform_0, window_bounds = array<i64: 2, 512>}, {pipeline_mode = #tpu.pipeline_mode<synchronous>, transform_indices = @transform_1, window_bounds = array<i64: 32, 2>}, {pipeline_mode = #tpu.pipeline_mode<synchronous>, transform_indices = @transform_2, window_bounds = array<i64: 32, 1>}, {pipeline_mode = #tpu.pipeline_mode<synchronous>, transform_indices = @transform_3, window_bounds = array<i64: 32, 32>}, {pipeline_mode = #tpu.pipeline_mode<synchronous>, transform_indices = @transform_4, window_bounds = array<i64: 32, 1>}, {pipeline_mode = #tpu.pipeline_mode<synchronous>, transform_indices = @transform_5, window_bounds = array<i64: 32, 32>}, {pipeline_mode = #tpu.pipeline_mode<synchronous>, transform_indices = @transform_6, window_bounds = array<i64: 32, 1>}, {pipeline_mode = #tpu.pipeline_mode<synchronous>, transform_indices = @transform_7, window_bounds = array<i64: 1, 1>}, {pipeline_mode = #tpu.pipeline_mode<synchronous>, transform_indices = @transform_8, window_bounds = array<i64: 32, 1>}, {transform_indices = @transform_9, window_bounds = array<i64: 3, 512>}]} {
    %c0 = arith.constant 0 : index
    %c0_0 = arith.constant 0 : index
    %0 = vector.load %arg1[%c0, %c0_0] : memref<2x512xf32, #tpu.memory_space<vmem>>, vector<2x512xf32>
    %c0_1 = arith.constant 0 : index
    %c0_2 = arith.constant 0 : index
    %1 = vector.load %arg2[%c0_1, %c0_2] : memref<32x2xf32, #tpu.memory_space<vmem>>, vector<32x2xf32>
    %2 = vector.extract_strided_slice %1 {offsets = [0, 0], sizes = [32, 1], strides = [1, 1]} : vector<32x2xf32> to vector<32x1xf32>
    %3 = vector.extract_strided_slice %0 {offsets = [0, 0], sizes = [1, 512], strides = [1, 1]} : vector<2x512xf32> to vector<1x512xf32>
    %4 = vector.broadcast %2 : vector<32x1xf32> to vector<32x512xf32>
    %5 = vector.broadcast %3 : vector<1x512xf32> to vector<32x512xf32>
    %6 = arith.mulf %4, %5 : vector<32x512xf32>
    %7 = vector.extract_strided_slice %1 {offsets = [0, 1], sizes = [32, 1], strides = [1, 1]} : vector<32x2xf32> to vector<32x1xf32>
    %8 = vector.extract_strided_slice %0 {offsets = [1, 0], sizes = [1, 512], strides = [1, 1]} : vector<2x512xf32> to vector<1x512xf32>
    %9 = vector.broadcast %7 : vector<32x1xf32> to vector<32x512xf32>
    %10 = vector.broadcast %8 : vector<1x512xf32> to vector<32x512xf32>
    %11 = arith.mulf %9, %10 : vector<32x512xf32>
    %12 = arith.addf %6, %11 : vector<32x512xf32>
    %c0_3 = arith.constant 0 : index
    %c0_4 = arith.constant 0 : index
    %13 = vector.load %arg3[%c0_3, %c0_4] : memref<32x1xf32, #tpu.memory_space<vmem>>, vector<32x1xf32>
    %14 = vector.broadcast %13 : vector<32x1xf32> to vector<32x512xf32>
    %15 = arith.addf %12, %14 : vector<32x512xf32>
    %16 = math.tanh %15 : vector<32x512xf32>
    %c0_5 = arith.constant 0 : index
    %c0_6 = arith.constant 0 : index
    %17 = vector.load %arg4[%c0_5, %c0_6] : memref<32x32xf32, #tpu.memory_space<vmem>>, vector<32x32xf32>
    %cst = arith.constant dense<0.000000e+00> : vector<32x512xf32>
    %18 = tpu.matmul %17, %16, %cst {dimension_numbers = #tpu.dot_dimension_numbers<[1], [0], [0], [1], [0, 0, 1, 1], [], []>} : vector<32x32xf32>, vector<32x512xf32>, vector<32x512xf32> -> vector<32x512xf32>
    %c0_7 = arith.constant 0 : index
    %c0_8 = arith.constant 0 : index
    %19 = vector.load %arg5[%c0_7, %c0_8] : memref<32x1xf32, #tpu.memory_space<vmem>>, vector<32x1xf32>
    %20 = vector.broadcast %19 : vector<32x1xf32> to vector<32x512xf32>
    %21 = arith.addf %18, %20 : vector<32x512xf32>
    %22 = math.tanh %21 : vector<32x512xf32>
    %c0_9 = arith.constant 0 : index
    %c0_10 = arith.constant 0 : index
    %23 = vector.load %arg7[%c0_9, %c0_10] : memref<32x1xf32, #tpu.memory_space<vmem>>, vector<32x1xf32>
    %c0_11 = arith.constant 0 : index
    %c0_12 = arith.constant 0 : index
    %24 = vector.load %arg8[%c0_11, %c0_12] : memref<1x1xf32, #tpu.memory_space<vmem>>, vector<1x1xf32>
    %25 = vector.broadcast %23 : vector<32x1xf32> to vector<32x512xf32>
    %26 = arith.mulf %25, %22 : vector<32x512xf32>
    %cst_13 = arith.constant dense<0.000000e+00> : vector<512xf32>
    %27 = vector.multi_reduction <add>, %26, %cst_13 [0] : vector<32x512xf32> to vector<512xf32>
    %28 = vector.shape_cast %27 : vector<512xf32> to vector<1x512xf32>
    %29 = vector.broadcast %24 : vector<1x1xf32> to vector<1x512xf32>
    %30 = arith.addf %28, %29 : vector<1x512xf32>
    %c0_14 = arith.constant 0 : index
    %c0_15 = arith.constant 0 : index
    %31 = vector.load %arg10[%c0_14, %c0_15] : memref<3x512xf32, #tpu.memory_space<vmem>>, vector<1x512xf32>
    tpu.vector_store %arg10[%c0_14, %c0_15], %30 {strides = array<i32>} : memref<3x512xf32, #tpu.memory_space<vmem>>, vector<1x512xf32>,
    %c0_16 = arith.constant 0 : index
    %c0_17 = arith.constant 0 : index
    %32 = vector.load %arg9[%c0_16, %c0_17] : memref<32x1xf32, #tpu.memory_space<vmem>>, vector<32x1xf32>
    %33 = arith.mulf %22, %22 : vector<32x512xf32>
    %cst_18 = arith.constant 1.000000e+00 : f32
    %34 = vector.broadcast %cst_18 : f32 to vector<32x512xf32>
    %35 = arith.subf %34, %33 : vector<32x512xf32>
    %36 = vector.broadcast %32 : vector<32x1xf32> to vector<32x512xf32>
    %37 = arith.mulf %36, %35 : vector<32x512xf32>
    %c0_19 = arith.constant 0 : index
    %c0_20 = arith.constant 0 : index
    %38 = vector.load %arg6[%c0_19, %c0_20] : memref<32x32xf32, #tpu.memory_space<vmem>>, vector<32x32xf32>
    %cst_21 = arith.constant dense<0.000000e+00> : vector<32x512xf32>
    %39 = tpu.matmul %38, %37, %cst_21 {dimension_numbers = #tpu.dot_dimension_numbers<[1], [0], [0], [1], [0, 0, 1, 1], [], []>} : vector<32x32xf32>, vector<32x512xf32>, vector<32x512xf32> -> vector<32x512xf32>
    %40 = arith.mulf %16, %16 : vector<32x512xf32>
    %cst_22 = arith.constant 1.000000e+00 : f32
    %41 = vector.broadcast %cst_22 : f32 to vector<32x512xf32>
    %42 = arith.subf %41, %40 : vector<32x512xf32>
    %43 = arith.mulf %39, %42 : vector<32x512xf32>
    %44 = vector.extract_strided_slice %1 {offsets = [0, 0], sizes = [32, 1], strides = [1, 1]} : vector<32x2xf32> to vector<32x1xf32>
    %45 = vector.broadcast %44 : vector<32x1xf32> to vector<32x512xf32>
    %46 = arith.mulf %45, %43 : vector<32x512xf32>
    %cst_23 = arith.constant dense<0.000000e+00> : vector<512xf32>
    %47 = vector.multi_reduction <add>, %46, %cst_23 [0] : vector<32x512xf32> to vector<512xf32>
    %48 = vector.shape_cast %47 : vector<512xf32> to vector<1x512xf32>
    %c1 = arith.constant 1 : index
    %c0_24 = arith.constant 0 : index
    %49 = vector.load %arg10[%c1, %c0_24] : memref<3x512xf32, #tpu.memory_space<vmem>>, vector<1x512xf32>
    tpu.vector_store %arg10[%c1, %c0_24], %48 {strides = array<i32>} : memref<3x512xf32, #tpu.memory_space<vmem>>, vector<1x512xf32>,
    %50 = vector.extract_strided_slice %1 {offsets = [0, 1], sizes = [32, 1], strides = [1, 1]} : vector<32x2xf32> to vector<32x1xf32>
    %51 = vector.broadcast %50 : vector<32x1xf32> to vector<32x512xf32>
    %52 = arith.mulf %51, %43 : vector<32x512xf32>
    %cst_25 = arith.constant dense<0.000000e+00> : vector<512xf32>
    %53 = vector.multi_reduction <add>, %52, %cst_25 [0] : vector<32x512xf32> to vector<512xf32>
    %54 = vector.shape_cast %53 : vector<512xf32> to vector<1x512xf32>
    %c2 = arith.constant 2 : index
    %c0_26 = arith.constant 0 : index
    %55 = vector.load %arg10[%c2, %c0_26] : memref<3x512xf32, #tpu.memory_space<vmem>>, vector<1x512xf32>
    tpu.vector_store %arg10[%c2, %c0_26], %54 {strides = array<i32>} : memref<3x512xf32, #tpu.memory_space<vmem>>, vector<1x512xf32>,
    return
  }
  func.func @transform_0(%arg0: i32) -> (i32, i32) {
    %c0_i32 = arith.constant 0 : i32
    %c0_i32_0 = arith.constant 0 : i32
    return %c0_i32, %arg0 : i32, i32
  }
  func.func @transform_1(%arg0: i32) -> (i32, i32) {
    %c0_i32 = arith.constant 0 : i32
    %c0_i32_0 = arith.constant 0 : i32
    %c0_i32_1 = arith.constant 0 : i32
    return %c0_i32, %c0_i32_0 : i32, i32
  }
  func.func @transform_2(%arg0: i32) -> (i32, i32) {
    %c0_i32 = arith.constant 0 : i32
    %c0_i32_0 = arith.constant 0 : i32
    %c0_i32_1 = arith.constant 0 : i32
    return %c0_i32, %c0_i32_0 : i32, i32
  }
  func.func @transform_3(%arg0: i32) -> (i32, i32) {
    %c0_i32 = arith.constant 0 : i32
    %c0_i32_0 = arith.constant 0 : i32
    %c0_i32_1 = arith.constant 0 : i32
    return %c0_i32, %c0_i32_0 : i32, i32
  }
  func.func @transform_4(%arg0: i32) -> (i32, i32) {
    %c0_i32 = arith.constant 0 : i32
    %c0_i32_0 = arith.constant 0 : i32
    %c0_i32_1 = arith.constant 0 : i32
    return %c0_i32, %c0_i32_0 : i32, i32
  }
  func.func @transform_5(%arg0: i32) -> (i32, i32) {
    %c0_i32 = arith.constant 0 : i32
    %c0_i32_0 = arith.constant 0 : i32
    %c0_i32_1 = arith.constant 0 : i32
    return %c0_i32, %c0_i32_0 : i32, i32
  }
  func.func @transform_6(%arg0: i32) -> (i32, i32) {
    %c0_i32 = arith.constant 0 : i32
    %c0_i32_0 = arith.constant 0 : i32
    %c0_i32_1 = arith.constant 0 : i32
    return %c0_i32, %c0_i32_0 : i32, i32
  }
  func.func @transform_7(%arg0: i32) -> (i32, i32) {
    %c0_i32 = arith.constant 0 : i32
    %c0_i32_0 = arith.constant 0 : i32
    %c0_i32_1 = arith.constant 0 : i32
    return %c0_i32, %c0_i32_0 : i32, i32
  }
  func.func @transform_8(%arg0: i32) -> (i32, i32) {
    %c0_i32 = arith.constant 0 : i32
    %c0_i32_0 = arith.constant 0 : i32
    %c0_i32_1 = arith.constant 0 : i32
    return %c0_i32, %c0_i32_0 : i32, i32
  }
  func.func @transform_9(%arg0: i32) -> (i32, i32) {
    %c0_i32 = arith.constant 0 : i32
    %c0_i32_0 = arith.constant 0 : i32
    return %c0_i32, %arg0 : i32, i32
  }
}

</mosaic_0001>

<bundles_post_ra>
// kernel: pinn_forward.1
= control target key start
LH: loop header
LB: loop body
LE: loop exit
PB: predicated region body
PF: predicated region fallthrough
CT: control target
= control target key end

     0   :  { %s2285_s0 = inlined_call_operand.vmem [shape: f32[2,1024], index: 0, kind: input, shape index: {}]   ;;  %s2286_s1 = inlined_call_operand.vmem [shape: f32[32,2], index: 1, kind: input, shape index: {}]   ;;  %s2287_s2 = inlined_call_operand.vmem [shape: f32[32,1], index: 2, kind: input, shape index: {}]   ;;  %s2288_s3 = inlined_call_operand.vmem [shape: f32[32,32], index: 3, kind: input, shape index: {}]   ;;  %s2289_s4 = inlined_call_operand.vmem [shape: f32[32,1], index: 4, kind: input, shape index: {}]   ;;  %s2290_s5 = inlined_call_operand.vmem [shape: f32[32,32], index: 5, kind: input, shape index: {}]   ;;  %s2291_s6 = inlined_call_operand.vmem [shape: f32[32,1], index: 6, kind: input, shape index: {}, may-alias: {6,8}]   ;;  %s2292_s7 = inlined_call_operand.<no memory space> [shape: f32[1,1], index: 7, kind: input, shape index: {}]   ;;  %s2293_s8 = inlined_call_operand.vmem [shape: f32[32,1], index: 8, kind: input, shape index: {}, may-alias: {6,8}]   ;;  %s2294_s9 = inlined_call_operand.hbm [shape: f32[3,1024], index: 9, kind: output, shape index: {}]  }
   0x1   :  { %v14_v0 = vstv %s2292_s7 }
   0x2   :  { %15 = vst [vmem:[#allocation2] sm:$0x1] %v14_v0 }
   0x3   :  { %16 = vsyncpa [#allocation4], 0 }
   0x4   :  { %18 = vsyncpa [#allocation4 + $0x1], 0  ;;  %s1765_s11 = smov 0   ;;  %s1767_s12 = smov 0  }
   0x5   :  { %s1769_s13 = smov 0   ;;  %s1771_s14 = smov 0  }
   0x6 LB: > { %s1786_s7 = sadd.s32 4294967295, %s1705_s14   ;;  %s1467_s15 = sadd.s32 4294967294, %s1705_s14   ;;  %s1705_s14 = sphi %s1771_s14, %s2324_s14   ;;  %s1701_s13 = sphi %s1769_s13, %s2323_s13   ;;  %s1697_s12 = sphi %s1767_s12, %s2322_s12   ;;  %s1693_s11 = sphi %s1765_s11, %s2321_s11  }
   0x7   : > { %s1790_s16 = sadd.s32 1, %s1705_s14   ;;  %s225_s17 = sadd.s32 1, %s1701_s13 }
   0x8   : > { %s222_s18 = ssub.s32 %s1705_s14, %s1790_s16  ;;  %p235_p0 = scmp.ne.s32.totalorder %s1701_s13, %s1697_s12 }
   0x9   : > { %p223_p1 = scmp.eq.s32.totalorder %s222_s18, 0  ;;  %p236_p2 = scmp.eq.s32.totalorder %s1786_s7, 1 }
   0xa   : > { %p241_p3 = scmp.ne.s32.totalorder %s1697_s12, %s1693_s11  ;;  %p242_p4 = scmp.eq.s32.totalorder %s1467_s15, 1 }
   0xb   : > { %s1801_s19 = scalar_select %p223_p1, %s1701_s13, %s225_s17  }
   0xc   : > { %p1803_p5 = por %p236_p2, %p235_p0  ;;  %p1807_p6 = por %p242_p4, %p241_p3 }
   0xd   : > { %p1470_p7 = scmp.ge.s32.totalorder %s1705_s14, 1  ;;  %p293_p8 = scmp.lt.s32.totalorder %s1705_s14, 3 }
   0xf   : > { %p294_p9 = pnand %p1470_p7, %p293_p8 }
  0x11   : > { %297 = sbr.rel (%p294_p9) target bundleno = 732 (0x2dc), region = 56 }
  0x18   : > { %v339_v1 = vld [vmem:[%s2286_s1 + $0x10] sm:$0xff]  ;;  %v337_v2 = vld [vmem:[%s2286_s1] sm:$0xff]  ;;  %v1707_v3 = vmov 1   ;;  %v338_v4 = vld [vmem:[%s2286_s1 + $0x8] sm:$0xff]  ;;  %v1708_v5 = vmov 0   ;;  %v2296_v24 = vmov 0.0   ;;  %v2295_v25 = vlaneseq }
  0x19   : > { %1575 = vset.pattern.permute.xlu0 %v1707_v3  ;;  %1573 = vset.pattern.permute.xlu1 %v1707_v3  ;;  %v340_v6 = vld [vmem:[%s2286_s1 + $0x18] sm:$0xff]  ;;  %v499_v7 = vld [vmem:[%s2287_s2 + $0x8] sm:$0xff]  ;;  %v498_v8 = vld [vmem:[%s2287_s2] sm:$0xff]  ;;  %s1472_s23 = sshll.u32 %s1786_s7, 2  ;;  %vm582_vm0 = vcmask 261120   ;;  %s326_s25 = sand.u32 1, %s1697_s12  }
  0x1a   : > { %423 = vperm.xlu0 %1575, %v339_v1   ;;  %415 = vperm.xlu1 %1573, %v337_v2   ;;  %v558_v9 = vld [vmem:[%s2289_s4] sm:$0xff]  ;;  %v500_v10 = vld [vmem:[%s2287_s2 + $0x10] sm:$0xff]  ;;  %v501_v12 = vld [vmem:[%s2287_s2 + $0x18] sm:$0xff]  ;;  %p330_p10 = scmp.lt.s32.totalorder %s1472_s23, 7  ;;  %v1877_v26 = vshrl.u32 %v2295_v25, 7  ;;  %s1471_s28 = sshll.u32 %s326_s25, 4 }
  0x1b   : > { %v560_v11 = vld [vmem:[%s2289_s4 + $0x10] sm:$0xff]  ;;  %v913_v13 = vld [vmem:[%s2293_s8] sm:$0xff]  ;;  %v559_v14 = vld [vmem:[%s2289_s4 + $0x8] sm:$0xff]  ;;  %659 = vmatprep.mubr.f32.mxu0 %v2296_v24  ;;  %748 = vmatprep.mubr.f32.mxu1 %v2296_v24  ;;  %s2133_s17 = scalar_lea.vmem [#allocation3], %s1471_s28  ;;  %s1497_s18 = sshll.u32 %s1786_s7, 8 }
  0x1c   : > { %v915_v15 = vld [vmem:[%s2293_s8 + $0x10] sm:$0xff]  ;;  %v561_v16 = vld [vmem:[%s2289_s4 + $0x18] sm:$0xff]  ;;  %v789_v17 = vld [vmem:[%s2291_s6] sm:$0xff]  ;;  %s2326_s23 = smov (!%p330_p10, %s1472_s23), 7  ;;  %v432_v27 = vsub.s32 1, %v1877_v26  ;;  %v436_v28 = vsub.s32 3, %v1877_v26  ;;  %s2235_s26 = scalar_lea.hbm %s2294_s9, %s1497_s18 }
  0x1d   : > { %v914_v18 = vld [vmem:[%s2293_s8 + $0x8] sm:$0xff]  ;;  %v791_v19 = vld [vmem:[%s2291_s6 + $0x10] sm:$0xff]  ;;  %v916_v20 = vld [vmem:[%s2293_s8 + $0x18] sm:$0xff]  ;;  %s1473_s24 = sshll.u32 %s2326_s23, 1  ;;  %v440_v31 = vsub.s32 5, %v1877_v26  ;;  %v1890_v33 = vsub.s32 0, %v1877_v26 }
  0x1e   : > { %1576 = vset.pattern.permute.xlu0 %v1708_v5  ;;  %419 = vperm.xlu1 %1573, %v338_v4   ;;  %v793_v21 = vld [vmem:[#allocation2] sm:$0x1]  ;;  %v790_v22 = vld [vmem:[%s2291_s6 + $0x8] sm:$0xff]  ;;  %v792_v23 = vld [vmem:[%s2291_s6 + $0x18] sm:$0xff]  ;;  %s333_s27 = scalar_lea.vmem %s2285_s0, %s1473_s24  ;;  %v368_v34 = vsub.s32 2, %v1877_v26  ;;  %v444_v35 = vsub.s32 7, %v1877_v26 }
  0x1f   : > { %343 = vperm.xlu0 %1576, %v337_v2   ;;  %v336_v32 = vld [vmem:[%s333_s27] sm:$0xff]  ;;  %v372_v36 = vsub.s32 4, %v1877_v26  ;;  %v376_v37 = vsub.s32 6, %v1877_v26  ;;  %s1408_s22 = sshll.u32 %s2133_s17, 4  ;;  %s1394_s7 = scalar_lea.sflag [#allocation4], %s326_s25  ;;  %s2237_s22 = int_to_ptr.vmem [resolvable:$true] %s1408_s22 }
  0x20   : > { %v433_v38 = vrot.slane %v336_v32, %v432_v27  ;;  %v437_v39 = vrot.slane %v336_v32, %v436_v28  ;;  %v441_v41 = vrot.slane %v336_v32, %v440_v31  ;;  %v365_v43 = vrot.slane %v336_v32, %v1890_v33  ;;  %s1643_s27 = scalar_lea.vmem %s2237_s22, 256  ;;  %s1711_s28 = smov [#allocation3]  }
  0x21   : > { %v369_v44 = vrot.slane %v336_v32, %v368_v34  ;;  %v445_v45 = vrot.slane %v336_v32, %v444_v35  ;;  %v373_v46 = vrot.slane %v336_v32, %v372_v36  ;;  %v377_v47 = vrot.slane %v336_v32, %v376_v37  ;;  %p1644_p11 = scmp.ne.s32.totalorder %s2237_s22, %s1643_s27  ;;  %s1647_s29 = sshll.u32 %s1711_s28, 4  ;;  %s1648_s29 = int_to_ptr.vmem [resolvable:$false] %s1647_s29 }
  0x22   : > { %1574 = vset.pattern.permute.xlu1 %v1708_v5  ;;  %v453_v48 = vrot.slane %v433_v38, %v432_v27  ;;  %v1901_v49 = vrot.slane %v437_v39, %v432_v27  ;;  %v1903_v50 = vrot.slane %v441_v41, %v432_v27  ;;  %v385_v53 = vrot.slane %v365_v43, %v1890_v33  ;;  %s1649_s30 = scalar_lea.vmem %s1648_s29, 512  ;;  %p1650_p0 = scmp.lt.s32.totalorder %s2237_s22, %s1648_s29 }
  0x23   : > { %348 = vperm.xlu0 %1576, %v338_v4   ;;  %358 = vperm.xlu1 %1574, %v340_v6   ;;  %v389_v54 = vrot.slane %v369_v44, %v1890_v33  ;;  %v1911_v55 = vrot.slane %v445_v45, %v432_v27  ;;  %v1914_v56 = vrot.slane %v373_v46, %v1890_v33  ;;  %p1645_p12 = pnand %p1644_p11, %p1803_p5  ;;  %p1651_p1 = scmp.lt.s32.totalorder %s1649_s30, %s1643_s27 }
  0x24   : > { %v1917_v57 = vrot.slane %v377_v47, %v1890_v33 }
  0x25   : > { %p1646_p13 = pneg %p1645_p12  ;;  %p1652_p2 = por %p1651_p1, %p1650_p0 }
  0x27   : > { %353 = vperm.xlu0 %1576, %v339_v1   ;;  %1577 = vset.pattern.permute.xlu1 %v1707_v3  ;;  %p1653_p3 = pnand %p1652_p2, %p1646_p13 }
  0x28   : > { %427 = vperm.xlu1 %1577, %v340_v6  }
  0x2b   : > { %509 = vperm.xlu0 %1576, %v499_v7  }
  0x2c   : > { %1578 = vset.pattern.permute.xlu1 %v1708_v5 }
  0x2d   : > { %504 = vperm.xlu1 %1578, %v498_v8  }
  0x2f   : > { %564 = vperm.xlu0 %1576, %v558_v9  }
  0x31   : > { %514 = vperm.xlu1 %1578, %v500_v10  }
  0x33   : > { %574 = vperm.xlu0 %1576, %v560_v11  }
  0x35   : > { %519 = vperm.xlu1 %1578, %v501_v12  }
  0x37   : > { %951 = vperm.xlu0 %1576, %v913_v13  }
  0x39   : > { %569 = vperm.xlu1 %1578, %v559_v14  }
  0x3b   : > { %961 = vperm.xlu0 %1576, %v915_v15  }
  0x3d   : > { %579 = vperm.xlu1 %1578, %v561_v16  }
  0x3f   : > { %796 = vperm.xlu0 %1576, %v789_v17  }
  0x41   : > { %956 = vperm.xlu1 %1578, %v914_v18  }
  0x43   : > { %806 = vperm.xlu0 %1576, %v791_v19  }
  0x45   : > { %966 = vperm.xlu1 %1578, %v916_v20  }
  0x47   : > { %868 = vperm.xlu0 %1576, %v793_v21  }
  0x49   : > { %801 = vperm.xlu1 %1578, %v790_v22  }
  0x4d   : > { %811 = vperm.xlu1 %1578, %v792_v23  }
  0x99   : > { %v1884_v29 = vpop.permute.xlu1 %415  ;;  %v1886_v30 = vpop.permute.xlu0 %423 }
  0x9a   : > { %2308 = vst [vmem:[#allocation6_spill] sm:$0xff] %v1886_v30  ;;  %v466_v58 = vmul.f32 %v453_v48, %v1884_v29  ;;  %v467_v59 = vmul.f32 %v1901_v49, %v1884_v29  ;;  %v468_v63 = vmul.f32 %v1903_v50, %v1884_v29  ;;  %v469_v4 = vmul.f32 %v1911_v55, %v1884_v29 }
  0x9b   : > { %v474_v9 = vmul.f32 %v453_v48, %v1886_v30  ;;  %v475_v13 = vmul.f32 %v1901_v49, %v1886_v30  ;;  %v476_v17 = vmul.f32 %v1903_v50, %v1886_v30  ;;  %v477_v22 = vmul.f32 %v1911_v55, %v1886_v30 }
  0x9d   : > { %v1896_v40 = vpop.permute.xlu1 %419 }
  0x9e   : > { %v1898_v42 = vpop.permute.xlu0 %343  ;;  %v470_v6 = vmul.f32 %v453_v48, %v1896_v40  ;;  %v471_v7 = vmul.f32 %v1901_v49, %v1896_v40  ;;  %v472_v8 = vmul.f32 %v1903_v50, %v1896_v40  ;;  %v473_v10 = vmul.f32 %v1911_v55, %v1896_v40 }
  0x9f   : > { %v398_v2 = vmul.f32 %v385_v53, %v1898_v42  ;;  %v399_v3 = vmul.f32 %v389_v54, %v1898_v42  ;;  %v400_v11 = vmul.f32 %v1914_v56, %v1898_v42  ;;  %v401_v12 = vmul.f32 %v1917_v57, %v1898_v42 }
  0xa1   : > { %v482_v20 = vadd.f32 %v466_v58, %v398_v2  ;;  %v483_v21 = vadd.f32 %v467_v59, %v399_v3  ;;  %v484_v35 = vadd.f32 %v468_v63, %v400_v11  ;;  %v485_v36 = vadd.f32 %v469_v4, %v401_v12 }
  0xa2   : > { %v1905_v51 = vpop.permute.xlu0 %348  ;;  %v1907_v52 = vpop.permute.xlu1 %358 }
  0xa3   : > { %2309 = vst [vmem:[#allocation7_spill] sm:$0xff] %v1907_v52  ;;  %v402_v60 = vmul.f32 %v385_v53, %v1905_v51  ;;  %v403_v61 = vmul.f32 %v389_v54, %v1905_v51  ;;  %v404_v62 = vmul.f32 %v1914_v56, %v1905_v51  ;;  %v405_v1 = vmul.f32 %v1917_v57, %v1905_v51 }
  0xa4   : > { %v410_v41 = vmul.f32 %v385_v53, %v1907_v52  ;;  %v411_v45 = vmul.f32 %v389_v54, %v1907_v52  ;;  %v412_v4 = vmul.f32 %v1914_v56, %v1907_v52 }
  0xa5   : > { %v486_v14 = vadd.f32 %v470_v6, %v402_v60  ;;  %v487_v15 = vadd.f32 %v471_v7, %v403_v61  ;;  %v488_v16 = vadd.f32 %v472_v8, %v404_v62  ;;  %v489_v19 = vadd.f32 %v473_v10, %v405_v1 }
  0xa6   : > { %v1928_v0 = vpop.permute.xlu0 %353  ;;  %v413_v8 = vmul.f32 %v1917_v57, %v1907_v52 }
  0xa7   : > { %2310 = vst [vmem:[#allocation8_spill] sm:$0xff] %v1928_v0  ;;  %v1936_v5 = vpop.permute.xlu1 %427  ;;  %v406_v31 = vmul.f32 %v385_v53, %v1928_v0  ;;  %v407_v37 = vmul.f32 %v389_v54, %v1928_v0  ;;  %v408_v39 = vmul.f32 %v1914_v56, %v1928_v0  ;;  %v409_v44 = vmul.f32 %v1917_v57, %v1928_v0 }
  0xa8   : > { %2311 = vst [vmem:[#allocation9_spill] sm:$0xff] %v1936_v5  ;;  %v478_v58 = vmul.f32 %v453_v48, %v1936_v5  ;;  %v479_v62 = vmul.f32 %v1901_v49, %v1936_v5  ;;  %v480_v1 = vmul.f32 %v1903_v50, %v1936_v5  ;;  %v481_v3 = vmul.f32 %v1911_v55, %v1936_v5 }
  0xa9   : > { %v490_v47 = vadd.f32 %v474_v9, %v406_v31  ;;  %v491_v61 = vadd.f32 %v475_v13, %v407_v37  ;;  %v492_v53 = vadd.f32 %v476_v17, %v408_v39  ;;  %v493_v54 = vadd.f32 %v477_v22, %v409_v44  ;;  %v554_v44 = vld [vmem:[%s2288_s3] sm:$0xff] }
  0xaa   : > { %v510_v18 = vpop.permute.xlu0 %509  ;;  %v494_v6 = vadd.f32 %v478_v58, %v410_v41  ;;  %v495_v9 = vadd.f32 %v479_v62, %v411_v45  ;;  %v496_v50 = vadd.f32 %v480_v1, %v412_v4  ;;  %v497_v11 = vadd.f32 %v481_v3, %v413_v8  ;;  %v555_v45 = vld [vmem:[%s2288_s3 + $0x8] sm:$0xff] }
  0xab   : > { %v526_v23 = vadd.f32 %v510_v18, %v486_v14  ;;  %v527_v27 = vadd.f32 %v510_v18, %v487_v15  ;;  %v528_v28 = vadd.f32 %v510_v18, %v488_v16  ;;  %v529_v32 = vadd.f32 %v510_v18, %v489_v19 }
  0xac   : > { %v505_v34 = vpop.permute.xlu1 %504 }
  0xad   : > { %1579 = vtanh.f32 %v526_v23  ;;  %v522_v38 = vadd.f32 %v505_v34, %v482_v20  ;;  %v523_v43 = vadd.f32 %v505_v34, %v483_v21  ;;  %v524_v46 = vadd.f32 %v505_v34, %v484_v35 }
  0xae   : > { %1581 = vtanh.f32 %v527_v27  ;;  %v525_v59 = vadd.f32 %v505_v34, %v485_v36  ;;  %v565_v58 = vpop.permute.xlu0 %564 }
  0xaf   : > { %1583 = vtanh.f32 %v528_v28 }
  0xb0   : > { %1585 = vtanh.f32 %v529_v32  ;;  %v515_v60 = vpop.permute.xlu1 %514 }
  0xb1   : > { %1587 = vtanh.f32 %v522_v38  ;;  %v530_v63 = vadd.f32 %v515_v60, %v490_v47  ;;  %v531_v2 = vadd.f32 %v515_v60, %v491_v61  ;;  %v532_v48 = vadd.f32 %v515_v60, %v492_v53  ;;  %v557_v47 = vld [vmem:[%s2288_s3 + $0x18] sm:$0xff] }
  0xb2   : > { %1589 = vtanh.f32 %v523_v43  ;;  %v533_v49 = vadd.f32 %v515_v60, %v493_v54  ;;  %v575_v60 = vpop.permute.xlu0 %574 }
  0xb3   : > { %1591 = vtanh.f32 %v524_v46  ;;  %v556_v46 = vld [vmem:[%s2288_s3 + $0x10] sm:$0xff] }
  0xb4   : > { %1593 = vtanh.f32 %v525_v59  ;;  %v520_v7 = vpop.permute.xlu1 %519 }
  0xb5   : > { %1595 = vtanh.f32 %v530_v63  ;;  %v534_v10 = vadd.f32 %v520_v7, %v494_v6  ;;  %v535_v12 = vadd.f32 %v520_v7, %v495_v9  ;;  %v536_v13 = vadd.f32 %v520_v7, %v496_v50 }
  0xb6   : > { %1597 = vtanh.f32 %v531_v2  ;;  %v537_v56 = vadd.f32 %v520_v7, %v497_v11  ;;  %v2053_v53 = vpop.permute.xlu0 %951 }
  0xb7   : > { %v1975_v55 = vpop.eup %1579  ;;  %1599 = vtanh.f32 %v532_v48 }
  0xb8   : > { %v1977_v14 = vpop.eup %1581  ;;  %1601 = vtanh.f32 %v533_v49  ;;  %v570_v59 = vpop.permute.xlu1 %569 }
  0xb9   : > { %v1979_v15 = vpop.eup %1583  ;;  %1603 = vtanh.f32 %v534_v10 }
  0xba   : > { %v1981_v16 = vpop.eup %1585  ;;  %1605 = vtanh.f32 %v535_v12  ;;  %v2057_v10 = vpop.permute.xlu0 %961 }
  0xbb   : > { %v1983_v57 = vpop.eup %1587  ;;  %1607 = vtanh.f32 %v536_v13 }
  0xbc   : > { %v1985_v17 = vpop.eup %1589  ;;  %1609 = vtanh.f32 %v537_v56  ;;  %v1500_v18 = vpack.c.bf16 %v1975_v55, %v1983_v57  ;;  %v2051_v61 = vpop.permute.xlu1 %579 }
  0xbd   : > { %v1989_v19 = vpop.eup %1591  ;;  %v1498_v20 = vpack.c.bf16 %v1977_v14, %v1985_v17 }
  0xbe   : > { %v1993_v21 = vpop.eup %1593  ;;  %v1508_v22 = vpack.c.bf16 %v1979_v15, %v1989_v19 }
  0xbf   : > { %v1997_v23 = vpop.eup %1595  ;;  %1499 = vmatprep.subr.bf16.mxu0 %v1498_v20  ;;  %v1506_v27 = vpack.c.bf16 %v1981_v16, %v1993_v21 }
  0xc0   : > { %v2001_v28 = vpop.eup %1597  ;;  %1501 = vmatpush1.bf16.msra.mxu0 %v1500_v18  ;;  %v2055_v49 = vpop.permute.xlu1 %956 }
  0xc1   : > { %v2003_v31 = vpop.eup %1599  ;;  %1507 = vmatprep.subr.bf16.mxu1 %v1506_v27 }
  0xc2   : > { %v2005_v32 = vpop.eup %1601  ;;  %1509 = vmatpush1.bf16.msra.mxu1 %v1508_v22  ;;  %v1710_v22 = vmov 1966171168  }
  0xc3   : > { %v2007_v34 = vpop.eup %1603  ;;  %v2059_v27 = vunpack.c.l.s4 %v1710_v22 }
  0xc4   : > { %v2009_v35 = vpop.eup %1605  ;;  %v1504_v36 = vpack.c.bf16 %v2007_v34, %v1997_v23 }
  0xc5   : > { %v2013_v37 = vpop.eup %1607  ;;  %v1502_v38 = vpack.c.bf16 %v2009_v35, %v2001_v28 }
  0xc6   : > { %v2017_v39 = vpop.eup %1609  ;;  %v1512_v41 = vpack.c.bf16 %v2013_v37, %v2003_v31 }
  0xc7   : > { %1503 = vmatprep.subr.bf16.mxu0 %v1502_v38  ;;  %v1510_v43 = vpack.c.bf16 %v2017_v39, %v2005_v32 }
  0xc8   : > { %1505 = vmatpush1.bf16.msra.mxu0 %v1504_v36 }
  0xc9   : > { %1511 = vmatprep.subr.bf16.mxu1 %v1510_v43 }
  0xca   : > { %1513 = vmatpush1.bf16.msra.mxu1 %v1512_v41  ;;  %v2061_v41 = vpop.permute.xlu1 %966 }
  0xcb   : > { %1474 = vmatmul.mubr.msk.f32.vlgmr.msra.gmra.mrb[0].mxu0 %vm582_vm0, %v554_v44 }
  0xcc   : > { %665 = vmatprep.mubr.f32.mxu0 %v2296_v24 }
  0xcd   : > { %1478 = vmatmul.mubr.msk.f32.vlgmr.msra.gmra.mrb[0].mxu1 %vm582_vm0, %v554_v44 }
  0xce   : > { %754 = vmatprep.mubr.f32.mxu1 %v2296_v24 }
  0xcf   : > { %1475 = vmatmul.mubr.msk.f32.gmra.mrb[2].mxu0 %vm582_vm0, %v555_v45 }
  0xd0   : > { %671 = vmatprep.mubr.f32.mxu0 %v2296_v24 }
  0xd1   : > { %1479 = vmatmul.mubr.msk.f32.gmra.mrb[2].mxu1 %vm582_vm0, %v555_v45 }
  0xd2   : > { %760 = vmatprep.mubr.f32.mxu1 %v2296_v24 }
  0xd3   : > { %1476 = vmatmul.mubr.msk.f32.gmra.mrb[4].mxu0 %vm582_vm0, %v556_v46 }
  0xd4   : > { %677 = vmatprep.mubr.f32.mxu0 %v2296_v24 }
  0xd5   : > { %1480 = vmatmul.mubr.msk.f32.gmra.mrb[4].mxu1 %vm582_vm0, %v556_v46 }
  0xd6   : > { %766 = vmatprep.mubr.f32.mxu1 %v2296_v24 }
  0xd7   : > { %1477 = vmatmul.mubr.msk.f32.gmra.mrb[6].mxu0 %vm582_vm0, %v557_v47 }
  0xd8   : > { %1065 = vmatprep.mubr.f32.mxu0 %v2296_v24 }
  0xd9   : > { %1481 = vmatmul.mubr.msk.f32.gmra.mrb[6].mxu1 %vm582_vm0, %v557_v47 }
  0xda   : > { %1154 = vmatprep.mubr.f32.mxu1 %v2296_v24 }
 0x19e   : > { %v661_v62 = vpop.f32.mrb[0].mxu0 }
 0x19f   : > { %v662_v63 = vadd.f32 %v661_v62, %v565_v58  ;;  %v663_v1 = vpop.f32.mrb[1].mxu0 }
 0x1a0   : > { %v750_v54 = vpop.f32.mrb[0].mxu1  ;;  %v664_v2 = vadd.f32 %v663_v1, %v565_v58 }
 0x1a1   : > { %1611 = vtanh.f32 %v662_v63  ;;  %v751_v3 = vadd.f32 %v750_v54, %v565_v58  ;;  %v752_v48 = vpop.f32.mrb[1].mxu1 }
 0x1a2   : > { %1613 = vtanh.f32 %v664_v2  ;;  %v753_v4 = vadd.f32 %v752_v48, %v565_v58  ;;  %v667_v6 = vpop.f32.mrb[2].mxu0  ;;  %v797_v58 = vpop.permute.xlu0 %796 }
 0x1a3   : > { %1615 = vtanh.f32 %v751_v3  ;;  %v668_v7 = vadd.f32 %v667_v6, %v570_v59  ;;  %v669_v8 = vpop.f32.mrb[3].mxu0 }
 0x1a4   : > { %1617 = vtanh.f32 %v753_v4  ;;  %v756_v9 = vpop.f32.mrb[2].mxu1  ;;  %v670_v50 = vadd.f32 %v669_v8, %v570_v59 }
 0x1a5   : > { %1619 = vtanh.f32 %v668_v7  ;;  %v757_v11 = vadd.f32 %v756_v9, %v570_v59  ;;  %v758_v12 = vpop.f32.mrb[3].mxu1 }
 0x1a6   : > { %1621 = vtanh.f32 %v670_v50  ;;  %v759_v13 = vadd.f32 %v758_v12, %v570_v59  ;;  %v673_v56 = vpop.f32.mrb[4].mxu0 }
 0x1a7   : > { %1623 = vtanh.f32 %v757_v11  ;;  %v674_v18 = vadd.f32 %v673_v56, %v575_v60  ;;  %v675_v20 = vpop.f32.mrb[5].mxu0  ;;  %v802_v56 = vpop.permute.xlu1 %801 }
 0x1a8   : > { %1625 = vtanh.f32 %v759_v13  ;;  %v762_v36 = vpop.f32.mrb[4].mxu1  ;;  %v676_v38 = vadd.f32 %v675_v20, %v575_v60 }
 0x1a9   : > { %1627 = vtanh.f32 %v674_v18  ;;  %v763_v43 = vadd.f32 %v762_v36, %v575_v60  ;;  %v764_v44 = vpop.f32.mrb[5].mxu1 }
 0x1aa   : > { %1629 = vtanh.f32 %v676_v38  ;;  %v765_v45 = vadd.f32 %v764_v44, %v575_v60  ;;  %v679_v46 = vpop.f32.mrb[6].mxu0 }
 0x1ab   : > { %v1612_v47 = vpop.eup %1611  ;;  %1631 = vtanh.f32 %v763_v43  ;;  %v680_v59 = vadd.f32 %v679_v46, %v2051_v61  ;;  %v681_v62 = vpop.f32.mrb[7].mxu0 }
 0x1ac   : > { %v1614_v1 = vpop.eup %1613  ;;  %v814_v54 = vmul.f32 %v1612_v47, %v797_v58  ;;  %1633 = vtanh.f32 %v765_v45  ;;  %v768_v2 = vpop.f32.mrb[6].mxu1  ;;  %v682_v3 = vadd.f32 %v681_v62, %v2051_v61  ;;  %v917_v48 = vmul.f32 %v1612_v47, %v1612_v47 }
 0x1ad   : > { %v1616_v4 = vpop.eup %1615  ;;  %v815_v6 = vmul.f32 %v1614_v1, %v797_v58  ;;  %1635 = vtanh.f32 %v680_v59  ;;  %v769_v60 = vadd.f32 %v768_v2, %v2051_v61  ;;  %v770_v7 = vpop.f32.mrb[7].mxu1  ;;  %v918_v8 = vmul.f32 %v1614_v1, %v1614_v1 }
 0x1ae   : > { %v1618_v9 = vpop.eup %1617  ;;  %v816_v50 = vmul.f32 %v1616_v4, %v797_v58  ;;  %1637 = vtanh.f32 %v682_v3  ;;  %v771_v11 = vadd.f32 %v770_v7, %v2051_v61  ;;  %v933_v12 = vsub.f32 1.0, %v917_v48 }
 0x1af   : > { %v1620_v13 = vpop.eup %1619  ;;  %v817_v18 = vmul.f32 %v1618_v9, %v797_v58  ;;  %1639 = vtanh.f32 %v769_v60  ;;  %v934_v20 = vsub.f32 1.0, %v918_v8  ;;  %v920_v22 = vmul.f32 %v1618_v9, %v1618_v9  ;;  %v807_v60 = vpop.permute.xlu0 %806 }
 0x1b0   : > { %v1622_v36 = vpop.eup %1621  ;;  %v818_v38 = vmul.f32 %v1620_v13, %v802_v56  ;;  %1641 = vtanh.f32 %v771_v11  ;;  %v921_v43 = vmul.f32 %v1620_v13, %v1620_v13  ;;  %v969_v44 = vmul.f32 %v2053_v53, %v933_v12 }
 0x1b1   : > { %v1624_v45 = vpop.eup %1623  ;;  %v819_v46 = vmul.f32 %v1622_v36, %v802_v56  ;;  %v922_v47 = vmul.f32 %v1622_v36, %v1622_v36  ;;  %v970_v59 = vmul.f32 %v2053_v53, %v934_v20  ;;  %v936_v62 = vsub.f32 1.0, %v920_v22 }
 0x1b2   : > { %v1626_v61 = vpop.eup %1625  ;;  %v830_v1 = vadd.f32 %v818_v38, %v814_v54  ;;  %v820_v2 = vmul.f32 %v1624_v45, %v802_v56  ;;  %v937_v3 = vsub.f32 1.0, %v921_v43  ;;  %v919_v58 = vmul.f32 %v1616_v4, %v1616_v4 }
 0x1b3   : > { %v2070_v48 = vpop.eup %1627  ;;  %v839_v7 = vadd.f32 %v819_v46, %v815_v6  ;;  %v821_v8 = vmul.f32 %v1626_v61, %v802_v56  ;;  %v938_v9 = vsub.f32 1.0, %v922_v47  ;;  %v924_v11 = vmul.f32 %v1626_v61, %v1626_v61  ;;  %v812_v61 = vpop.permute.xlu1 %811 }
 0x1b4   : > { %v1630_v13 = vpop.eup %1629  ;;  %v848_v12 = vadd.f32 %v820_v2, %v816_v50  ;;  %v822_v25 = vmul.f32 %v2070_v48, %v807_v60  ;;  %v972_v36 = vmul.f32 %v2053_v53, %v936_v62  ;;  %v973_v20 = vmul.f32 %v2055_v49, %v937_v3 }
 0x1b5   : > { %v2075_v22 = vpop.eup %1631  ;;  %v857_v54 = vadd.f32 %v821_v8, %v817_v18  ;;  %v823_v38 = vmul.f32 %v1630_v13, %v807_v60  ;;  %v974_v4 = vmul.f32 %v2055_v49, %v938_v9  ;;  %v940_v43 = vsub.f32 1.0, %v924_v11 }
 0x1b6   : > { %v1634_v24 = vpop.eup %1633  ;;  %v831_v6 = vadd.f32 %v830_v1, %v822_v25  ;;  %v824_v56 = vmul.f32 %v2075_v22, %v807_v60  ;;  %v1516_v46 = vpack.c.bf16 %v973_v20, %v969_v44  ;;  %v923_v47 = vmul.f32 %v1624_v45, %v1624_v45 }
 0x1b7   : > { %v1636_v50 = vpop.eup %1635  ;;  %v840_v2 = vadd.f32 %v839_v7, %v823_v38  ;;  %v825_v63 = vmul.f32 %v1634_v24, %v807_v60  ;;  %v1514_v62 = vpack.c.bf16 %v974_v4, %v970_v59  ;;  %v976_v3 = vmul.f32 %v2055_v49, %v940_v43 }
 0x1b8   : > { %v1638_v5 = vpop.eup %1637  ;;  %v849_v52 = vadd.f32 %v848_v12, %v824_v56  ;;  %v826_v18 = vmul.f32 %v1636_v50, %v812_v61  ;;  %v935_v8 = vsub.f32 1.0, %v919_v58  ;;  %v939_v30 = vsub.f32 1.0, %v923_v47 }
 0x1b9   : > { %v1640_v9 = vpop.eup %1639  ;;  %v858_v11 = vadd.f32 %v857_v54, %v825_v63  ;;  %v827_v0 = vmul.f32 %v1638_v5, %v812_v61  ;;  %1515 = vmatprep.subr.bf16.mxu0 %v1514_v62  ;;  %v1522_v25 = vpack.c.bf16 %v976_v3, %v972_v36  ;;  %v926_v1 = vmul.f32 %v1630_v13, %v1630_v13 }
 0x1ba   : > { %v1642_v44 = vpop.eup %1641  ;;  %v832_v45 = vadd.f32 %v831_v6, %v826_v18  ;;  %v828_v20 = vmul.f32 %v1640_v9, %v812_v61  ;;  %1517 = vmatpush1.bf16.msra.mxu0 %v1516_v46  ;;  %v971_v60 = vmul.f32 %v2053_v53, %v935_v8  ;;  %v975_v59 = vmul.f32 %v2055_v49, %v939_v30 }
 0x1bb   : > { %v841_v7 = vadd.f32 %v840_v2, %v827_v0  ;;  %v829_v38 = vmul.f32 %v1642_v44, %v812_v61  ;;  %1523 = vmatprep.subr.bf16.mxu1 %v1522_v25  ;;  %v930_v12 = vmul.f32 %v1638_v5, %v1638_v5  ;;  %v942_v58 = vsub.f32 1.0, %v926_v1 }
 0x1bc   : > { %v833_v4 = vrot.slane %v832_v45, 4  ;;  %v850_v43 = vadd.f32 %v849_v52, %v828_v20  ;;  %v1524_v63 = vpack.c.bf16 %v975_v59, %v971_v60  ;;  %v928_v54 = vmul.f32 %v1634_v24, %v1634_v24  ;;  %v869_v20 = vpop.permute.xlu0 %868 }
 0x1bd   : > { %v842_v56 = vrot.slane %v841_v7, 4  ;;  %v859_v36 = vadd.f32 %v858_v11, %v829_v38  ;;  %v946_v13 = vsub.f32 1.0, %v930_v12  ;;  %v978_v6 = vmul.f32 %v2057_v10, %v942_v58 }
 0x1be   : > { %v834_v47 = vadd.f32 %v833_v4, %v832_v45  ;;  %v851_v46 = vrot.slane %v850_v43, 4  ;;  %1525 = vmatpush1.bf16.msra.mxu1 %v1524_v63  ;;  %v932_v53 = vmul.f32 %v1642_v44, %v1642_v44  ;;  %v944_v62 = vsub.f32 1.0, %v928_v54 }
 0x1bf   : > { %v843_v30 = vadd.f32 %v842_v56, %v841_v7  ;;  %v860_v0 = vrot.slane %v859_v36, 4  ;;  %v982_v49 = vmul.f32 %v2061_v41, %v946_v13  ;;  %v925_v5 = vmul.f32 %v2070_v48, %v2070_v48 }
 0x1c0   : > { %v835_v52 = vrot.slane %v834_v47, 2  ;;  %v852_v61 = vadd.f32 %v851_v46, %v850_v43  ;;  %v948_v24 = vsub.f32 1.0, %v932_v53  ;;  %v980_v2 = vmul.f32 %v2057_v10, %v944_v62 }
 0x1c1   : > { %v844_v3 = vrot.slane %v843_v30, 2  ;;  %v861_v18 = vadd.f32 %v860_v0, %v859_v36  ;;  %v1518_v8 = vpack.c.bf16 %v982_v49, %v978_v6  ;;  %v929_v11 = vmul.f32 %v1636_v50, %v1636_v50 }
 0x1c2   : > { %v836_v25 = vadd.f32 %v835_v52, %v834_v47  ;;  %v853_v1 = vrot.slane %v852_v61, 2  ;;  %v984_v44 = vmul.f32 %v2061_v41, %v948_v24  ;;  %v941_v45 = vsub.f32 1.0, %v925_v5  ;;  %v985_v52 = vld [vmem:[%s2290_s5] sm:$0xff] }
 0x1c3   : > { %v845_v60 = vadd.f32 %v844_v3, %v843_v30  ;;  %v862_v59 = vrot.slane %v861_v18, 2  ;;  %1519 = vmatprep.subr.bf16.mxu0 %v1518_v8  ;;  %v945_v7 = vsub.f32 1.0, %v929_v11  ;;  %v927_v48 = vmul.f32 %v2075_v22, %v2075_v22  ;;  %v987_v11 = vld [vmem:[%s2290_s5 + $0x10] sm:$0xff] }
 0x1c4   : > { %v837_v38 = vrot.slane %v836_v25, 1  ;;  %v854_v12 = vadd.f32 %v853_v1, %v852_v61  ;;  %v1526_v58 = vpack.c.bf16 %v984_v44, %v980_v2  ;;  %v977_v4 = vmul.f32 %v2057_v10, %v941_v45 }
 0x1c5   : > { %v846_v43 = vrot.slane %v845_v60, 1  ;;  %v863_v50 = vadd.f32 %v862_v59, %v861_v18  ;;  %v981_v63 = vmul.f32 %v2061_v41, %v945_v7  ;;  %v931_v54 = vmul.f32 %v1640_v9, %v1640_v9 }
 0x1c6   : > { %v874_v56 = vrot.slane %v869_v20, %v1890_v33  ;;  %v838_v36 = vadd.f32 %v837_v38, %v836_v25  ;;  %v855_v13 = vrot.slane %v854_v12, 1  ;;  %1527 = vmatprep.subr.bf16.mxu1 %v1526_v58  ;;  %v943_v6 = vsub.f32 1.0, %v927_v48  ;;  %v988_v20 = vld [vmem:[%s2290_s5 + $0x18] sm:$0xff] }
 0x1c7   : > { %v847_v47 = vadd.f32 %v846_v43, %v845_v60  ;;  %v864_v46 = vrot.slane %v863_v50, 1  ;;  %v1520_v53 = vpack.c.bf16 %v981_v63, %v977_v4  ;;  %v947_v22 = vsub.f32 1.0, %v931_v54 }
 0x1c8   : > { %v856_v62 = vadd.f32 %v855_v13, %v854_v12  ;;  %v2312_v30 = vunpack.c.0.s8 %v2059_v27  ;;  %v875_v49 = vadd.f32 %v874_v56, %v838_v36  ;;  %v979_v33 = vmul.f32 %v2057_v10, %v943_v6  ;;  %v986_v10 = vld [vmem:[%s2290_s5 + $0x8] sm:$0xff] }
 0x1c9   : > { %v865_v5 = vadd.f32 %v864_v46, %v863_v50  ;;  %1521 = vmatpush1.bf16.msra.mxu0 %v1520_v53  ;;  %v983_v9 = vmul.f32 %v2061_v41, %v947_v22  ;;  %v876_v61 = vadd.f32 %v874_v56, %v847_v47  ;;  %v2314_v1 = vlaneseq }
 0x1ca   : > { %v2096_v0 = vsub.s32 %v2312_v30, %v1877_v26  ;;  %v877_v24 = vadd.f32 %v874_v56, %v856_v62  ;;  %v2313_v26 = vmov 0.0   ;;  %v1179_v60 = vmul.f32 %v1983_v57, %v1983_v57 }
 0x1cb   : > { %v1528_v2 = vpack.c.bf16 %v983_v9, %v979_v33  ;;  %v878_v3 = vadd.f32 %v874_v56, %v865_v5  ;;  %v883_v18 = vcombine.low %v875_v49, %v876_v61  ;;  %vm2121_vm1 = vcmp.lt.s32.totalorder %v2314_v1, 512 }
 0x1cc   : > { %1482 = vmatmul.mubr.msk.f32.vlgmr.msra.gmra.mrb[8].mxu0 %vm582_vm0, %v985_v52  ;;  %v1180_v59 = vmul.f32 %v1985_v17, %v1985_v17  ;;  %v1183_v7 = vmul.f32 %v1975_v55, %v1975_v55  ;;  %v1185_v48 = vmul.f32 %v1979_v15, %v1979_v15  ;;  %v1184_v38 = vmul.f32 %v1977_v14, %v1977_v14 }
 0x1cd   : > { %1529 = vmatpush1.bf16.msra.mxu1 %v1528_v2  ;;  %1071 = vmatprep.mubr.f32.mxu0 %v2313_v26  ;;  %v884_v27 = vcombine.low %v877_v24, %v878_v3  ;;  %v891_v41 = vrot.slane %v883_v18, %v2096_v0  ;;  %v1195_v12 = vsub.f32 1.0, %v1179_v60  ;;  %v1181_v58 = vmul.f32 %v1989_v19, %v1989_v19 }
 0x1ce   : > { %v1182_v4 = vmul.f32 %v1993_v21, %v1993_v21  ;;  %v1186_v57 = vmul.f32 %v1981_v16, %v1981_v16  ;;  %v1187_v17 = vmul.f32 %v1997_v23, %v1997_v23  ;;  %v2162_v55 = vmul.f32 %v2003_v31, %v2003_v31 }
 0x1cf   : > { %v898_v8 = vrot.slane %v884_v27, %v2096_v0  ;;  %v1188_v14 = vmul.f32 %v2001_v28, %v2001_v28  ;;  %v2168_v15 = vmul.f32 %v2005_v32, %v2005_v32  ;;  %v1196_v43 = vsub.f32 1.0, %v1180_v59 }
 0x1d0   : > { %1486 = vmatmul.mubr.msk.f32.vlgmr.msra.gmra.mrb[8].mxu1 %vm582_vm0, %v985_v52  ;;  %1483 = vmatmul.mubr.msk.f32.gmra.mrb[10].mxu0 %vm582_vm0, %v986_v10  ;;  %v2172_v21 = vmul.f32 %v2007_v34, %v2007_v34  ;;  %v2176_v16 = vmul.f32 %v2009_v35, %v2009_v35  ;;  %v1199_v50 = vsub.f32 1.0, %v1183_v7  ;;  %v1201_v63 = vsub.f32 1.0, %v1185_v48 }
 0x1d1   : > { %1160 = vmatprep.mubr.f32.mxu1 %v2313_v26  ;;  %1077 = vmatprep.mubr.f32.mxu0 %v2313_v26  ;;  %v899_v25 = vcombine.low %v891_v41, %v898_v8  ;;  %v1200_v54 = vsub.f32 1.0, %v1184_v38  ;;  %v1197_v28 = vsub.f32 1.0, %v1181_v58  ;;  %v1198_v36 = vsub.f32 1.0, %v1182_v4 }
 0x1d2   : > { %v1202_v32 = vsub.f32 1.0, %v1186_v57  ;;  %v1203_v13 = vsub.f32 1.0, %v1187_v17  ;;  %v1205_v6 = vsub.f32 1.0, %v2162_v55  ;;  %v1204_v47 = vsub.f32 1.0, %v1188_v14  ;;  %v2317_v57 = vld [vmem:[#allocation8_spill] sm:$0xff]  ;;  %v2318_v55 = vld [vmem:[#allocation6_spill] sm:$0xff] }
 0x1d3   : > { %v906_v45 = vrot.slane %v899_v25, %v2096_v0  ;;  %v1206_v34 = vsub.f32 1.0, %v2168_v15  ;;  %v1207_v35 = vsub.f32 1.0, %v2172_v21  ;;  %v2183_v22 = vmul.f32 %v2013_v37, %v2013_v37 }
 0x1d4   : > { %1487 = vmatmul.mubr.msk.f32.gmra.mrb[10].mxu1 %vm582_vm0, %v986_v10  ;;  %1484 = vmatmul.mubr.msk.f32.gmra.mrb[12].mxu0 %vm582_vm0, %v987_v11  ;;  %v1208_v62 = vsub.f32 1.0, %v2176_v16  ;;  %v2188_v30 = vmul.f32 %v2017_v39, %v2017_v39 }
 0x1d5   : > { %1166 = vmatprep.mubr.f32.mxu1 %v2313_v26  ;;  %1083 = vmatprep.mubr.f32.mxu0 %v2313_v26  ;;  %912 = vst.msk [vmem:[%s2133_s17] ss:$4 sm:$0xf] %vm2121_vm1, %v906_v45 }
 0x1d8   : > { %1488 = vmatmul.mubr.msk.f32.gmra.mrb[12].mxu1 %vm582_vm0, %v987_v11  ;;  %1485 = vmatmul.mubr.msk.f32.gmra.mrb[14].mxu0 %vm582_vm0, %v988_v20 }
 0x1d9   : > { %1172 = vmatprep.mubr.f32.mxu1 %v2313_v26 }
 0x1dc   : > { %1489 = vmatmul.mubr.msk.f32.gmra.mrb[14].mxu1 %vm582_vm0, %v988_v20 }
 0x29f   : > { %v1067_v19 = vpop.f32.mrb[8].mxu0 }
 0x2a0   : > { %v1211_v23 = vmul.f32 %v1195_v12, %v1067_v19  ;;  %v1069_v31 = vpop.f32.mrb[9].mxu0 }
 0x2a1   : > { %v1212_v56 = vmul.f32 %v1196_v43, %v1069_v31 }
 0x2a2   : > { %v1227_v49 = vmul.f32 %v1211_v23, %v1898_v42  ;;  %v1310_v5 = vmul.f32 %v1211_v23, %v1884_v29 }
 0x2a3   : > { %v1156_v46 = vpop.f32.mrb[8].mxu1  ;;  %v1073_v53 = vpop.f32.mrb[10].mxu0  ;;  %v1228_v24 = vmul.f32 %v1212_v56, %v1898_v42  ;;  %v1311_v2 = vmul.f32 %v1212_v56, %v1884_v29 }
 0x2a4   : > { %v1213_v33 = vmul.f32 %v1197_v28, %v1156_v46  ;;  %v1158_v9 = vpop.f32.mrb[9].mxu1  ;;  %v1215_v52 = vmul.f32 %v1199_v50, %v1073_v53  ;;  %v1075_v61 = vpop.f32.mrb[11].mxu0 }
 0x2a5   : > { %v1214_v37 = vmul.f32 %v1198_v36, %v1158_v9  ;;  %v1216_v3 = vmul.f32 %v1200_v54, %v1075_v61  ;;  %v1209_v9 = vsub.f32 1.0, %v2183_v22 }
 0x2a6   : > { %v1229_v18 = vmul.f32 %v1213_v33, %v1898_v42  ;;  %v1312_v26 = vmul.f32 %v1213_v33, %v1884_v29  ;;  %v1231_v39 = vmul.f32 %v1215_v52, %v1905_v51  ;;  %v1314_v10 = vmul.f32 %v1215_v52, %v1896_v40 }
 0x2a7   : > { %v1230_v27 = vmul.f32 %v1214_v37, %v1898_v42  ;;  %v1313_v41 = vmul.f32 %v1214_v37, %v1884_v29  ;;  %v1162_v8 = vpop.f32.mrb[10].mxu1  ;;  %v1232_v11 = vmul.f32 %v1216_v3, %v1905_v51  ;;  %v1315_v25 = vmul.f32 %v1216_v3, %v1896_v40  ;;  %v1079_v1 = vpop.f32.mrb[12].mxu0  ;;  %v2320_v37 = vld [vmem:[#allocation9_spill] sm:$0xff] }
 0x2a8   : > { %v1243_v45 = vadd.f32 %v1231_v39, %v1227_v49  ;;  %v1326_v20 = vadd.f32 %v1314_v10, %v1310_v5  ;;  %v1217_v60 = vmul.f32 %v1201_v63, %v1162_v8  ;;  %v1164_v59 = vpop.f32.mrb[11].mxu1  ;;  %v1219_v7 = vmul.f32 %v1203_v13, %v1079_v1  ;;  %v1081_v48 = vpop.f32.mrb[13].mxu0 }
 0x2a9   : > { %v1252_v38 = vadd.f32 %v1232_v11, %v1228_v24  ;;  %v1335_v12 = vadd.f32 %v1315_v25, %v1311_v2  ;;  %v1218_v58 = vmul.f32 %v1202_v32, %v1164_v59  ;;  %v1220_v4 = vmul.f32 %v1204_v47, %v1081_v48  ;;  %v2319_v2 = vld [vmem:[#allocation7_spill] sm:$0xff] }
 0x2aa   : > { %v1233_v42 = vmul.f32 %v1217_v60, %v1905_v51  ;;  %v1316_v29 = vmul.f32 %v1217_v60, %v1896_v40  ;;  %v1235_v17 = vmul.f32 %v1219_v7, %v2317_v57  ;;  %v1318_v14 = vmul.f32 %v1219_v7, %v2318_v55 }
 0x2ab   : > { %v1234_v15 = vmul.f32 %v1218_v58, %v1905_v51  ;;  %v1317_v19 = vmul.f32 %v1218_v58, %v1896_v40  ;;  %v1168_v43 = vpop.f32.mrb[12].mxu1  ;;  %v1236_v21 = vmul.f32 %v1220_v4, %v2317_v57  ;;  %v1319_v16 = vmul.f32 %v1220_v4, %v2318_v55  ;;  %v1085_v23 = vpop.f32.mrb[14].mxu0 }
 0x2ac   : > { %v1261_v31 = vadd.f32 %v1233_v42, %v1229_v18  ;;  %v1344_v50 = vadd.f32 %v1316_v29, %v1312_v26  ;;  %v1244_v63 = vadd.f32 %v1243_v45, %v1235_v17  ;;  %v1327_v54 = vadd.f32 %v1326_v20, %v1318_v14  ;;  %v1170_v28 = vpop.f32.mrb[13].mxu1  ;;  %v1087_v56 = vpop.f32.mrb[15].mxu0 }
 0x2ad   : > { %v1270_v36 = vadd.f32 %v1234_v15, %v1230_v27  ;;  %v1353_v32 = vadd.f32 %v1317_v19, %v1313_v41  ;;  %v1221_v13 = vmul.f32 %v1205_v6, %v1168_v43  ;;  %v1253_v47 = vadd.f32 %v1252_v38, %v1236_v21 }
 0x2ae   : > { %v1336_v46 = vadd.f32 %v1335_v12, %v1319_v16  ;;  %v1222_v51 = vmul.f32 %v1206_v34, %v1170_v28  ;;  %v1223_v53 = vmul.f32 %v1207_v35, %v1085_v23  ;;  %v1224_v40 = vmul.f32 %v1208_v62, %v1087_v56 }
 0x2af   : > { %v1237_v49 = vmul.f32 %v1221_v13, %v2317_v57  ;;  %v1320_v5 = vmul.f32 %v1221_v13, %v2318_v55  ;;  %v1174_v33 = vpop.f32.mrb[14].mxu1  ;;  %v1210_v52 = vsub.f32 1.0, %v2188_v30 }
 0x2b0   : > { %v1238_v61 = vmul.f32 %v1222_v51, %v2317_v57  ;;  %v1321_v24 = vmul.f32 %v1222_v51, %v2318_v55  ;;  %v1239_v6 = vmul.f32 %v1223_v53, %v2319_v2  ;;  %v1322_v3 = vmul.f32 %v1223_v53, %v2320_v37  ;;  %v1176_v34 = vpop.f32.mrb[15].mxu1 }
 0x2b1   : > { %v1262_v35 = vadd.f32 %v1261_v31, %v1237_v49  ;;  %v1345_v62 = vadd.f32 %v1344_v50, %v1320_v5  ;;  %v1225_v18 = vmul.f32 %v1209_v9, %v1174_v33  ;;  %v1240_v26 = vmul.f32 %v1224_v40, %v2319_v2 }
 0x2b2   : > { %v1271_v39 = vadd.f32 %v1270_v36, %v1238_v61  ;;  %v1354_v10 = vadd.f32 %v1353_v32, %v1321_v24  ;;  %v1245_v27 = vadd.f32 %v1244_v63, %v1239_v6  ;;  %v1328_v22 = vadd.f32 %v1327_v54, %v1322_v3 }
 0x2b3   : > { %v1241_v30 = vmul.f32 %v1225_v18, %v2319_v2  ;;  %v1324_v41 = vmul.f32 %v1225_v18, %v2320_v37  ;;  %v1254_v8 = vadd.f32 %v1253_v47, %v1240_v26  ;;  %v1323_v11 = vmul.f32 %v1224_v40, %v2320_v37 }
 0x2b4   : > { %v1246_v25 = vrot.slane %v1245_v27, 4  ;;  %v1329_v1 = vrot.slane %v1328_v22, 4  ;;  %v1226_v45 = vmul.f32 %v1210_v52, %v1176_v34 }
 0x2b5   : > { %v1263_v20 = vadd.f32 %v1262_v35, %v1241_v30  ;;  %v1346_v60 = vadd.f32 %v1345_v62, %v1324_v41  ;;  %v1255_v59 = vrot.slane %v1254_v8, 4  ;;  %v1337_v7 = vadd.f32 %v1336_v46, %v1323_v11 }
 0x2b6   : > { %v1247_v48 = vadd.f32 %v1246_v25, %v1245_v27  ;;  %v1330_v38 = vadd.f32 %v1329_v1, %v1328_v22  ;;  %v1242_v12 = vmul.f32 %v1226_v45, %v2319_v2  ;;  %v1325_v58 = vmul.f32 %v1226_v45, %v2320_v37 }
 0x2b7   : > { %v1264_v4 = vrot.slane %v1263_v20, 4  ;;  %v1347_v42 = vrot.slane %v1346_v60, 4  ;;  %v1256_v29 = vadd.f32 %v1255_v59, %v1254_v8  ;;  %v1338_v57 = vrot.slane %v1337_v7, 4 }
 0x2b8   : > { %v1248_v17 = vrot.slane %v1247_v48, 2  ;;  %v1331_v55 = vrot.slane %v1330_v38, 2  ;;  %v1272_v14 = vadd.f32 %v1271_v39, %v1242_v12  ;;  %v1355_v15 = vadd.f32 %v1354_v10, %v1325_v58 }
 0x2b9   : > { %v1265_v19 = vadd.f32 %v1264_v4, %v1263_v20  ;;  %v1348_v43 = vadd.f32 %v1347_v42, %v1346_v60  ;;  %v1257_v21 = vrot.slane %v1256_v29, 2  ;;  %v1339_v16 = vadd.f32 %v1338_v57, %v1337_v7 }
 0x2ba   : > { %v1249_v23 = vadd.f32 %v1248_v17, %v1247_v48  ;;  %v1332_v31 = vadd.f32 %v1331_v55, %v1330_v38  ;;  %v1273_v50 = vrot.slane %v1272_v14, 4  ;;  %v1356_v63 = vrot.slane %v1355_v15, 4 }
 0x2bb   : > { %v1266_v54 = vrot.slane %v1265_v19, 2  ;;  %v1349_v28 = vrot.slane %v1348_v43, 2  ;;  %v1258_v56 = vadd.f32 %v1257_v21, %v1256_v29  ;;  %v1340_v36 = vrot.slane %v1339_v16, 2 }
 0x2bc   : > { %v1250_v32 = vrot.slane %v1249_v23, 1  ;;  %v1333_v13 = vrot.slane %v1332_v31, 1  ;;  %v1274_v47 = vadd.f32 %v1273_v50, %v1272_v14  ;;  %v1357_v46 = vadd.f32 %v1356_v63, %v1355_v15 }
 0x2bd   : > { %v1267_v51 = vadd.f32 %v1266_v54, %v1265_v19  ;;  %v1350_v53 = vadd.f32 %v1349_v28, %v1348_v43  ;;  %v1259_v40 = vrot.slane %v1258_v56, 1  ;;  %v1341_v49 = vadd.f32 %v1340_v36, %v1339_v16 }
 0x2be   : > { %v1251_v5 = vadd.f32 %v1250_v32, %v1249_v23  ;;  %v1334_v33 = vadd.f32 %v1333_v13, %v1332_v31  ;;  %v1275_v9 = vrot.slane %v1274_v47, 2  ;;  %v1358_v52 = vrot.slane %v1357_v46, 2 }
 0x2bf   : > { %v1268_v61 = vrot.slane %v1267_v51, 1  ;;  %v1351_v24 = vrot.slane %v1350_v53, 1  ;;  %v1260_v2 = vadd.f32 %v1259_v40, %v1258_v56  ;;  %v1342_v6 = vrot.slane %v1341_v49, 1 }
 0x2c0   : > { %v1276_v37 = vadd.f32 %v1275_v9, %v1274_v47  ;;  %v1359_v3 = vadd.f32 %v1358_v52, %v1357_v46 }
 0x2c1   : > { %v1283_v34 = vcombine.low %v1251_v5, %v1260_v2  ;;  %v1343_v35 = vadd.f32 %v1342_v6, %v1341_v49  ;;  %v1269_v62 = vadd.f32 %v1268_v61, %v1267_v51  ;;  %v1352_v18 = vadd.f32 %v1351_v24, %v1350_v53 }
 0x2c2   : > { %v1277_v26 = vrot.slane %v1276_v37, 1  ;;  %v1360_v39 = vrot.slane %v1359_v3, 1 }
 0x2c3   : > { %v1366_v10 = vcombine.low %v1334_v33, %v1343_v35  ;;  %v1291_v30 = vrot.slane %v1283_v34, %v2096_v0 }
 0x2c4   : > { %v1278_v27 = vadd.f32 %v1277_v26, %v1276_v37  ;;  %v1361_v22 = vadd.f32 %v1360_v39, %v1359_v3 }
 0x2c5   : > { %v1374_v41 = vrot.slane %v1366_v10, %v2096_v0 }
 0x2c6   : > { %v1284_v8 = vcombine.low %v1269_v62, %v1278_v27  ;;  %v1367_v11 = vcombine.low %v1352_v18, %v1361_v22 }
 0x2c8   : > { %v1298_v25 = vrot.slane %v1284_v8, %v2096_v0  ;;  %v1381_v1 = vrot.slane %v1367_v11, %v2096_v0 }
 0x2ca   : > { %v1299_v45 = vcombine.low %v1291_v30, %v1298_v25  ;;  %v1382_v20 = vcombine.low %v1374_v41, %v1381_v1 }
 0x2cc   : > { %v1306_v60 = vrot.slane %v1299_v45, %v2096_v0  ;;  %v1389_v59 = vrot.slane %v1382_v20, %v2096_v0 }
 0x2ce   : > { %1490 = vst.msk [vmem:[%s2133_s17 + $0x1] ss:$4 sm:$0xf] %vm2121_vm1, %v1306_v60  ;;  %1491 = vst.msk [vmem:[%s2133_s17 + $0x2] ss:$4 sm:$0xf] %vm2121_vm1, %v1389_v59 }
 0x2cf   : > { %1656 = shalt.err (!%p1653_p3)
}
 0x2d0   : > { %s1657_s25 = scalar_lea.hbm %s2235_s26, 256  ;;  %s1661_s17 = scalar_lea.hbm %s2294_s9, 512 }
 0x2d1   : > { %p1658_p4 = scmp.ne.s32.totalorder %s2235_s26, %s1657_s25  ;;  %p1662_p9 = scmp.lt.u32.totalorder %s2235_s26, %s2294_s9 }
 0x2d2   : > { %p1663_p10 = scmp.lt.u32.totalorder %s1661_s17, %s1657_s25  ;;  %p1665_p12 = scmp.lt.u32.totalorder %s1657_s25, %s2235_s26 }
 0x2d3   : > { %p1659_p7 = pnand %p1658_p4, %p1803_p5 }
 0x2d4   : > { %p1664_p11 = por %p1663_p10, %p1662_p9 }
 0x2d5   : > { %p1660_p8 = pneg %p1659_p7 }
 0x2d6   : > { %p1666_p13 = por %p1665_p12, %p1664_p11 }
 0x2d8   : > { %p1667_p0 = pnand %p1666_p13, %p1660_p8 }
 0x2da   : > { %1670 = shalt.err (!%p1667_p0)
}
 0x2db   : > { %1530 = dma.vmem_to_hbm [thread:$0]  (%p1803_p5), %s2237_s22, 256, %s2235_s26, %s1394_s7  }
 0x2dc PF: > { %p1536_p1 = scmp.ge.s32.totalorder %s1705_s14, 2  ;;  %s1420_s24 = sand.u32 1, %s1693_s11  }
 0x2dd   : > { %s1421_s27 = scalar_lea.sflag [#allocation4], %s1420_s24 }
 0x2de   : > { %p1533_p2 = pnand %p1536_p1, %p1807_p6 }
 0x2e0   : > { %1688 = dma.done.wait (!%p1533_p2), %s1421_s27, 256  }
 0x2e1   : > { %1690 = vsyncadd (!%p1533_p2), %s1421_s27, 4294967040  ;;  %p21_p3 = scmp.ge.s32.totalorder %s1790_s16, 4   ;;  %s2321_s11 = smov %s1697_s12 }
 0x2e2   : > { %s2322_s12 = smov %s1701_s13  ;;  %s2323_s13 = smov %s1801_s19 }
 0x2e3   : > { %s2324_s14 = smov %s1790_s16  ;;  %23 = sbr.rel (!%p21_p3) target bundleno = 6 (0x6), region = 93 }
 0x2ea   :  { %1426 = vsyncpa [#allocation4], 1 }
 0x2eb   :  { %1428 = vsyncpa [#allocation4 + $0x1], 1 }

</bundles_post_ra>
